<compile_context>
chip_gen: v6e
topology: v6e:2x2x1
jax: 0.10.0
libtpu: 0.0.40
codegen_flags: <defaults>
</compile_context>

<pallas_src>
import functools

import jax
import jax.numpy as jnp
from jax.experimental import pallas as pl
from jax.experimental.pallas import tpu as pltpu

EPS = 1e-5          # nn.BatchNorm2d default eps
NEG_SLOPE = 0.1     # LeakyReLU negative slope
# Scoped-VMEM budget: leaves >=16 MiB headroom on v7x (64 MiB physical) and is far
# below the 128 MiB of v5e/v6e.  Per-sample blocks here are tiny.
VMEM_LIMIT_BYTES = 48 * 1024 * 1024


# --------------------------------------------------------------------------- #
# Shared inner helper: one output row of the (pre-bias) convolution.
# --------------------------------------------------------------------------- #
def _conv_row(xph_ref, w_ref, oh_idx, *, k, s, hq, ow, cout):
    """f32 conv output (no bias) for output row `oh_idx` of the current sample.

    xph_ref: (1, s*s*hq, wq, cin)  stride-phase-split padded input (compute dtype).
             Row index (pi*s + pj)*hq + q holds padded-input row  s*q + pi  of
             width-phase pj (i.e. padded-input cols  s*q_w + pj).
    w_ref:   (k*k, cin, cout) weights in tap-major order (kh*k + kw).
    Returns (ow, cout) f32.
    """
    acc = jnp.zeros((ow, cout), jnp.float32)
    for kh in range(k):
        pi, r = kh % s, kh // s
        for kw in range(k):
            pj, c = kw % s, kw // s
            base = (pi * s + pj) * hq + r          # static per-tap row offset
            # Contiguous slice: output row oh needs phase rows (oh + r) and
            # phase cols [c, c + ow)  -> shape (ow, cin), no strides, no reshape.
            xt = xph_ref[0, oh_idx + base, c:c + ow, :]
            acc = acc + jnp.dot(xt, w_ref[kh * k + kw],
                                preferred_element_type=jnp.float32)
    return acc


# --------------------------------------------------------------------------- #
# Pass 1: fused conv + BN batch statistics (no conv output written to HBM).
# --------------------------------------------------------------------------- #
def _conv_stats_kernel(xph_ref, w_ref, stats_ref, *, k, s, hq, n_oh, ow):
    cout = w_ref.shape[-1]

    def body(oh, carry):
        ssum, ssq = carry
        y = _conv_row(xph_ref, w_ref, oh, k=k, s=s, hq=hq, ow=ow, cout=cout)
        ssum = ssum + jnp.sum(y, axis=0, keepdims=True)
        ssq = ssq + jnp.sum(y * y, axis=0, keepdims=True)
        return ssum, ssq

    zero = jnp.zeros((1, cout), jnp.float32)
    ssum, ssq = jax.lax.fori_loop(0, n_oh, body, (zero, zero))
    # Simple direct row writes (review: no broadcast + select epilogue).
    stats_ref[0, 0:1, :] = ssum
    stats_ref[0, 1:2, :] = ssq


# --------------------------------------------------------------------------- #
# Pass 2: recompute conv, apply precomputed BN scale/shift, LeakyReLU(0.1).
# --------------------------------------------------------------------------- #
def _conv_bn_lrelu_kernel(xph_ref, w_ref, scale_ref, shift_ref, o_ref, *,
                          k, s, hq, n_oh, ow):
    cout = o_ref.shape[-1]
    scale = scale_ref[...]          # (1, cout) f32
    shift = shift_ref[...]          # (1, cout) f32

    def body(oh, carry):
        y = _conv_row(xph_ref, w_ref, oh, k=k, s=s, hq=hq, ow=ow, cout=cout)
        z = y * scale + shift
        z = jnp.where(z >= 0, z, NEG_SLOPE * z)
        o_ref[0, oh, :, :] = z.astype(o_ref.dtype)
        return carry

    jax.lax.fori_loop(0, n_oh, body, 0)


# --------------------------------------------------------------------------- #
# Wrapper
# --------------------------------------------------------------------------- #
def conv2d_block(x, weight, bias, gamma, beta, *, kernel_size=5, stride=2,
                 padding=2, compute_dtype=jnp.bfloat16, out_dtype=None,
                 data_format="NCHW"):
    """Forward of Conv2d(k, s, p) -> BatchNorm2d (train mode) -> LeakyReLU(0.1).

    x: (N, Cin, H, W).  Returns NCHW (PyTorch convention, default) or NHWC.

    Note on `bias`: the conv bias shifts each channel's batch mean by exactly +bias,
    so it cancels in training-mode BatchNorm ((y - mean) is bias-free).  It is
    therefore never added; this is mathematically exact and avoids the
    E[y^2] - E[y]^2 cancellation hazard when the bias is large.
    """
    del bias  # cancels exactly under training-mode BatchNorm (see docstring)
    n, cin, h, w = x.shape
    cout = weight.shape[0]
    k, s, p = kernel_size, stride, padding
    oh = (h + 2 * p - k) // s + 1
    ow = (w + 2 * p - k) // s + 1
    if out_dtype is None:
        out_dtype = x.dtype

    # --- stride-phase split (space-to-depth) of the zero-padded NHWC input -------
    # Per-phase spatial extents actually consumed by the conv taps.
    hq = oh + (k - 1) // s
    wq = ow + (k - 1) // s
    hp, wp = s * hq, s * wq                       # physical padded extent consumed
    xn = jnp.transpose(x, (0, 2, 3, 1)).astype(compute_dtype)             # NHWC
    xn = jnp.pad(xn, ((0, 0), (p, p + s), (p, p + s), (0, 0)))[:, :hp, :wp, :]
    # (N, hq, s, wq, s, Cin) -> (N, s, s, hq, wq, Cin) -> fold phases into rows so
    # the kernel sees a simple 4-D (N, s*s*hq, wq, Cin) tensor (~1x input size).
    xph = xn.reshape(n, hq, s, wq, s, cin).transpose(0, 2, 4, 1, 3, 5)
    xph = xph.reshape(n, s * s * hq, wq, cin)

    # Weights in tap-major (kh*k + kw, Cin, Cout) layout.
    w_r = jnp.transpose(weight, (2, 3, 1, 0)).reshape(k * k, cin, cout)
    w_r = w_r.astype(compute_dtype)

    cparams = pltpu.CompilerParams(
        dimension_semantics=("parallel",),        # one sample per core on megacore
        vmem_limit_bytes=VMEM_LIMIT_BYTES,
    )
    xph_spec = pl.BlockSpec((1, s * s * hq, wq, cin), lambda i: (i, 0, 0, 0))
    # Resident operand (constant index map).  For large cin*cout on v7x, add
    # pipeline_mode=pl.Buffered(1) here to drop its second VMEM buffer.
    w_spec = pl.BlockSpec((k * k, cin, cout), lambda i: (0, 0, 0))

    # ---- Pass 1: conv + BN statistics (stats only; no y written to HBM) ---------
    stats = pl.pallas_call(
        functools.partial(_conv_stats_kernel, k=k, s=s, hq=hq, n_oh=oh, ow=ow),
        grid=(n,),
        in_specs=[xph_spec, w_spec],
        out_specs=pl.BlockSpec((1, 2, cout), lambda i: (i, 0, 0)),
        out_shape=jax.ShapeDtypeStruct((n, 2, cout), jnp.float32),
        compiler_params=cparams,
    )(xph, w_r)

    # ---- Tiny finalize: batch mean / biased var -> affine scale & shift ----------
    m = n * oh * ow
    total = jnp.sum(stats, axis=0)                        # (2, cout)
    mean_c = total[0] / m                                 # mean of pre-bias conv
    var = jnp.maximum(total[1] / m - mean_c * mean_c, 0.0)
    inv_std = jax.lax.rsqrt(var + EPS)
    g32 = gamma.astype(jnp.float32)
    scale = (g32 * inv_std).reshape(1, cout)
    shift = (beta.astype(jnp.float32) - mean_c * g32 * inv_std).reshape(1, cout)

    # ---- Pass 2: recompute conv, normalize, LeakyReLU ----------------------------
    out = pl.pallas_call(
        functools.partial(_conv_bn_lrelu_kernel, k=k, s=s, hq=hq, n_oh=oh, ow=ow),
        grid=(n,),
        in_specs=[xph_spec, w_spec,
                  pl.BlockSpec((1, cout), lambda i: (0, 0)),
                  pl.BlockSpec((1, cout), lambda i: (0, 0))],
        out_specs=pl.BlockSpec((1, oh, ow, cout), lambda i: (i, 0, 0, 0)),
        out_shape=jax.ShapeDtypeStruct((n, oh, ow, cout), out_dtype),
        compiler_params=cparams,
    )(xph, w_r, scale, shift)

    if data_format == "NHWC":
        return out
    return jnp.transpose(out, (0, 3, 1, 2))   # PyTorch NCHW convention


# --------------------------------------------------------------------------- #
# Pure-JAX f32 reference of the PyTorch forward (training-mode BatchNorm)
# --------------------------------------------------------------------------- #
def _reference(x, weight, bias, gamma, beta, stride=2, padding=2):
    y = jax.lax.conv_general_dilated(
        x.astype(jnp.float32), weight.astype(jnp.float32),
        window_strides=(stride, stride),
        padding=((padding, padding), (padding, padding)),
        dimension_numbers=("NCHW", "OIHW", "NCHW"),
    ) + bias.reshape(1, -1, 1, 1)
    mean = y.mean(axis=(0, 2, 3), keepdims=True)
    var = ((y - mean) ** 2).mean(axis=(0, 2, 3), keepdims=True)
    y = gamma.reshape(1, -1, 1, 1) * (y - mean) * jax.lax.rsqrt(var + EPS) \
        + beta.reshape(1, -1, 1, 1)
    return jnp.where(y >= 0, y, NEG_SLOPE * y)


if __name__ == "__main__":
    # Deterministic small setup: cin=4, cout=8, x: (2, 4, 16, 16) NCHW.
    cin, cout, k = 4, 8, 5
    key = jax.random.PRNGKey(0)
    kx, kw, kb = jax.random.split(key, 3)

    x = jax.random.normal(kx, (2, cin, 16, 16), dtype=jnp.float32)
    weight = jax.random.normal(kw, (cout, cin, k, k), dtype=jnp.float32) * 0.1
    bias = jax.random.normal(kb, (cout,), dtype=jnp.float32) * 0.1
    gamma = jnp.ones((cout,), dtype=jnp.float32)   # BatchNorm2d default init
    beta = jnp.zeros((cout,), dtype=jnp.float32)

    ref = _reference(x, weight, bias, gamma, beta)
    assert ref.shape == (2, cout, 8, 8)

    # (a) default fast path: bf16 conv operands, f32 accumulation & statistics,
    #     NCHW output (PyTorch convention).
    out_bf16 = jax.block_until_ready(
        conv2d_block(x, weight, bias, gamma, beta, compute_dtype=jnp.bfloat16))
    assert out_bf16.shape == ref.shape, out_bf16.shape
    assert jnp.allclose(out_bf16, ref, atol=5e-2, rtol=5e-2), \
        float(jnp.max(jnp.abs(out_bf16 - ref)))

    # (b) f32 compute path with NHWC output (no final transpose): exercises the
    #     second layout path and the tighter-precision pipeline.
    out_f32 = jax.block_until_ready(
        conv2d_block(x, weight, bias, gamma, beta,
                     compute_dtype=jnp.float32, data_format="NHWC"))
    ref_nhwc = jnp.transpose(ref, (0, 2, 3, 1))
    assert out_f32.shape == ref_nhwc.shape, out_f32.shape
    assert jnp.allclose(out_f32, ref_nhwc, atol=1e-4, rtol=1e-4), \
        float(jnp.max(jnp.abs(out_f32 - ref_nhwc)))

    print("KERNEL_OK")
</pallas_src>

<mosaic_0001>
module attributes {stable_mosaic.version = 11 : i64} {
  func.func @_conv_stats_kernel(%arg0: i32, %arg1: memref<1x40x10x4xbf16, #tpu.memory_space<vmem>>, %arg2: memref<25x4x8xbf16, #tpu.memory_space<vmem>>, %arg3: memref<1x2x8xf32, #tpu.memory_space<vmem>>) attributes {dimension_semantics = [#tpu.dimension_semantics<parallel>], iteration_bounds = array<i64: 2>, scalar_prefetch = 0 : i64, scratch_operands = 0 : i64, tpu.core_type = #tpu.core_type<tc>, window_params = [{transform_indices = @transform_0, window_bounds = array<i64: 1, 40, 10, 4>}, {pipeline_mode = #tpu.pipeline_mode<synchronous>, transform_indices = @transform_1, window_bounds = array<i64: 25, 4, 8>}, {transform_indices = @transform_2, window_bounds = array<i64: 1, 2, 8>}]} {
    %cst = arith.constant 0.000000e+00 : f32
    %0 = vector.broadcast %cst : f32 to vector<1x8xf32>
    %c0_i32 = arith.constant 0 : i32
    %c8_i32 = arith.constant 8 : i32
    %1 = arith.addi %c0_i32, %c8_i32 : i32
    %c1_i32 = arith.constant 1 : i32
    %2:2 = scf.for %arg4 = %c0_i32 to %1 step %c1_i32 iter_args(%arg5 = %0, %arg6 = %0) -> (vector<1x8xf32>, vector<1x8xf32>)  : i32 {
      %cst_5 = arith.constant 0.000000e+00 : f32
      %9 = vector.broadcast %cst_5 : f32 to vector<8x8xf32>
      %c0_i32_6 = arith.constant 0 : i32
      %10 = arith.addi %arg4, %c0_i32_6 : i32
      %c0_7 = arith.constant 0 : index
      %11 = arith.index_cast %10 : i32 to index
      %c0_8 = arith.constant 0 : index
      %c0_9 = arith.constant 0 : index
      %12 = vector.load %arg1[%c0_7, %11, %c0_8, %c0_9] : memref<1x40x10x4xbf16, #tpu.memory_space<vmem>>, vector<1x1x8x4xbf16>
      %13 = vector.shape_cast %12 : vector<1x1x8x4xbf16> to vector<8x4xbf16>
      %c0_10 = arith.constant 0 : index
      %c0_11 = arith.constant 0 : index
      %c0_12 = arith.constant 0 : index
      %14 = vector.load %arg2[%c0_10, %c0_11, %c0_12] : memref<25x4x8xbf16, #tpu.memory_space<vmem>>, vector<1x4x8xbf16>
      %15 = vector.shape_cast %14 : vector<1x4x8xbf16> to vector<4x8xbf16>
      %cst_13 = arith.constant dense<0.000000e+00> : vector<8x8xf32>
      %16 = tpu.matmul %13, %15, %cst_13 {dimension_numbers = #tpu.dot_dimension_numbers<[1], [0], [0], [1], [0, 0, 1, 1], [], []>} : vector<8x4xbf16>, vector<4x8xbf16>, vector<8x8xf32> -> vector<8x8xf32>
      %17 = arith.addf %9, %16 : vector<8x8xf32>
      %c10_i32 = arith.constant 10 : i32
      %18 = arith.addi %arg4, %c10_i32 : i32
      %c0_14 = arith.constant 0 : index
      %19 = arith.index_cast %18 : i32 to index
      %c0_15 = arith.constant 0 : index
      %c0_16 = arith.constant 0 : index
      %20 = vector.load %arg1[%c0_14, %19, %c0_15, %c0_16] : memref<1x40x10x4xbf16, #tpu.memory_space<vmem>>, vector<1x1x8x4xbf16>
      %21 = vector.shape_cast %20 : vector<1x1x8x4xbf16> to vector<8x4xbf16>
      %c1_17 = arith.constant 1 : index
      %c0_18 = arith.constant 0 : index
      %c0_19 = arith.constant 0 : index
      %22 = vector.load %arg2[%c1_17, %c0_18, %c0_19] : memref<25x4x8xbf16, #tpu.memory_space<vmem>>, vector<1x4x8xbf16>
      %23 = vector.shape_cast %22 : vector<1x4x8xbf16> to vector<4x8xbf16>
      %cst_20 = arith.constant dense<0.000000e+00> : vector<8x8xf32>
      %24 = tpu.matmul %21, %23, %cst_20 {dimension_numbers = #tpu.dot_dimension_numbers<[1], [0], [0], [1], [0, 0, 1, 1], [], []>} : vector<8x4xbf16>, vector<4x8xbf16>, vector<8x8xf32> -> vector<8x8xf32>
      %25 = arith.addf %17, %24 : vector<8x8xf32>
      %c0_i32_21 = arith.constant 0 : i32
      %26 = arith.addi %arg4, %c0_i32_21 : i32
      %c0_22 = arith.constant 0 : index
      %27 = arith.index_cast %26 : i32 to index
      %c1_23 = arith.constant 1 : index
      %c0_24 = arith.constant 0 : index
      %28 = vector.load %arg1[%c0_22, %27, %c1_23, %c0_24] : memref<1x40x10x4xbf16, #tpu.memory_space<vmem>>, vector<1x1x8x4xbf16>
      %29 = vector.shape_cast %28 : vector<1x1x8x4xbf16> to vector<8x4xbf16>
      %c2 = arith.constant 2 : index
      %c0_25 = arith.constant 0 : index
      %c0_26 = arith.constant 0 : index
      %30 = vector.load %arg2[%c2, %c0_25, %c0_26] : memref<25x4x8xbf16, #tpu.memory_space<vmem>>, vector<1x4x8xbf16>
      %31 = vector.shape_cast %30 : vector<1x4x8xbf16> to vector<4x8xbf16>
      %cst_27 = arith.constant dense<0.000000e+00> : vector<8x8xf32>
      %32 = tpu.matmul %29, %31, %cst_27 {dimension_numbers = #tpu.dot_dimension_numbers<[1], [0], [0], [1], [0, 0, 1, 1], [], []>} : vector<8x4xbf16>, vector<4x8xbf16>, vector<8x8xf32> -> vector<8x8xf32>
      %33 = arith.addf %25, %32 : vector<8x8xf32>
      %c10_i32_28 = arith.constant 10 : i32
      %34 = arith.addi %arg4, %c10_i32_28 : i32
      %c0_29 = arith.constant 0 : index
      %35 = arith.index_cast %34 : i32 to index
      %c1_30 = arith.constant 1 : index
      %c0_31 = arith.constant 0 : index
      %36 = vector.load %arg1[%c0_29, %35, %c1_30, %c0_31] : memref<1x40x10x4xbf16, #tpu.memory_space<vmem>>, vector<1x1x8x4xbf16>
      %37 = vector.shape_cast %36 : vector<1x1x8x4xbf16> to vector<8x4xbf16>
      %c3 = arith.constant 3 : index
      %c0_32 = arith.constant 0 : index
      %c0_33 = arith.constant 0 : index
      %38 = vector.load %arg2[%c3, %c0_32, %c0_33] : memref<25x4x8xbf16, #tpu.memory_space<vmem>>, vector<1x4x8xbf16>
      %39 = vector.shape_cast %38 : vector<1x4x8xbf16> to vector<4x8xbf16>
      %cst_34 = arith.constant dense<0.000000e+00> : vector<8x8xf32>
      %40 = tpu.matmul %37, %39, %cst_34 {dimension_numbers = #tpu.dot_dimension_numbers<[1], [0], [0], [1], [0, 0, 1, 1], [], []>} : vector<8x4xbf16>, vector<4x8xbf16>, vector<8x8xf32> -> vector<8x8xf32>
      %41 = arith.addf %33, %40 : vector<8x8xf32>
      %c0_i32_35 = arith.constant 0 : i32
      %42 = arith.addi %arg4, %c0_i32_35 : i32
      %c0_36 = arith.constant 0 : index
      %43 = arith.index_cast %42 : i32 to index
      %c2_37 = arith.constant 2 : index
      %c0_38 = arith.constant 0 : index
      %44 = vector.load %arg1[%c0_36, %43, %c2_37, %c0_38] : memref<1x40x10x4xbf16, #tpu.memory_space<vmem>>, vector<1x1x8x4xbf16>
      %45 = vector.shape_cast %44 : vector<1x1x8x4xbf16> to vector<8x4xbf16>
      %c4 = arith.constant 4 : index
      %c0_39 = arith.constant 0 : index
      %c0_40 = arith.constant 0 : index
      %46 = vector.load %arg2[%c4, %c0_39, %c0_40] : memref<25x4x8xbf16, #tpu.memory_space<vmem>>, vector<1x4x8xbf16>
      %47 = vector.shape_cast %46 : vector<1x4x8xbf16> to vector<4x8xbf16>
      %cst_41 = arith.constant dense<0.000000e+00> : vector<8x8xf32>
      %48 = tpu.matmul %45, %47, %cst_41 {dimension_numbers = #tpu.dot_dimension_numbers<[1], [0], [0], [1], [0, 0, 1, 1], [], []>} : vector<8x4xbf16>, vector<4x8xbf16>, vector<8x8xf32> -> vector<8x8xf32>
      %49 = arith.addf %41, %48 : vector<8x8xf32>
      %c20_i32 = arith.constant 20 : i32
      %50 = arith.addi %arg4, %c20_i32 : i32
      %c0_42 = arith.constant 0 : index
      %51 = arith.index_cast %50 : i32 to index
      %c0_43 = arith.constant 0 : index
      %c0_44 = arith.constant 0 : index
      %52 = vector.load %arg1[%c0_42, %51, %c0_43, %c0_44] : memref<1x40x10x4xbf16, #tpu.memory_space<vmem>>, vector<1x1x8x4xbf16>
      %53 = vector.shape_cast %52 : vector<1x1x8x4xbf16> to vector<8x4xbf16>
      %c5 = arith.constant 5 : index
      %c0_45 = arith.constant 0 : index
      %c0_46 = arith.constant 0 : index
      %54 = vector.load %arg2[%c5, %c0_45, %c0_46] : memref<25x4x8xbf16, #tpu.memory_space<vmem>>, vector<1x4x8xbf16>
      %55 = vector.shape_cast %54 : vector<1x4x8xbf16> to vector<4x8xbf16>
      %cst_47 = arith.constant dense<0.000000e+00> : vector<8x8xf32>
      %56 = tpu.matmul %53, %55, %cst_47 {dimension_numbers = #tpu.dot_dimension_numbers<[1], [0], [0], [1], [0, 0, 1, 1], [], []>} : vector<8x4xbf16>, vector<4x8xbf16>, vector<8x8xf32> -> vector<8x8xf32>
      %57 = arith.addf %49, %56 : vector<8x8xf32>
      %c30_i32 = arith.constant 30 : i32
      %58 = arith.addi %arg4, %c30_i32 : i32
      %c0_48 = arith.constant 0 : index
      %59 = arith.index_cast %58 : i32 to index
      %c0_49 = arith.constant 0 : index
      %c0_50 = arith.constant 0 : index
      %60 = vector.load %arg1[%c0_48, %59, %c0_49, %c0_50] : memref<1x40x10x4xbf16, #tpu.memory_space<vmem>>, vector<1x1x8x4xbf16>
      %61 = vector.shape_cast %60 : vector<1x1x8x4xbf16> to vector<8x4xbf16>
      %c6 = arith.constant 6 : index
      %c0_51 = arith.constant 0 : index
      %c0_52 = arith.constant 0 : index
      %62 = vector.load %arg2[%c6, %c0_51, %c0_52] : memref<25x4x8xbf16, #tpu.memory_space<vmem>>, vector<1x4x8xbf16>
      %63 = vector.shape_cast %62 : vector<1x4x8xbf16> to vector<4x8xbf16>
      %cst_53 = arith.constant dense<0.000000e+00> : vector<8x8xf32>
      %64 = tpu.matmul %61, %63, %cst_53 {dimension_numbers = #tpu.dot_dimension_numbers<[1], [0], [0], [1], [0, 0, 1, 1], [], []>} : vector<8x4xbf16>, vector<4x8xbf16>, vector<8x8xf32> -> vector<8x8xf32>
      %65 = arith.addf %57, %64 : vector<8x8xf32>
      %c20_i32_54 = arith.constant 20 : i32
      %66 = arith.addi %arg4, %c20_i32_54 : i32
      %c0_55 = arith.constant 0 : index
      %67 = arith.index_cast %66 : i32 to index
      %c1_56 = arith.constant 1 : index
      %c0_57 = arith.constant 0 : index
      %68 = vector.load %arg1[%c0_55, %67, %c1_56, %c0_57] : memref<1x40x10x4xbf16, #tpu.memory_space<vmem>>, vector<1x1x8x4xbf16>
      %69 = vector.shape_cast %68 : vector<1x1x8x4xbf16> to vector<8x4xbf16>
      %c7 = arith.constant 7 : index
      %c0_58 = arith.constant 0 : index
      %c0_59 = arith.constant 0 : index
      %70 = vector.load %arg2[%c7, %c0_58, %c0_59] : memref<25x4x8xbf16, #tpu.memory_space<vmem>>, vector<1x4x8xbf16>
      %71 = vector.shape_cast %70 : vector<1x4x8xbf16> to vector<4x8xbf16>
      %cst_60 = arith.constant dense<0.000000e+00> : vector<8x8xf32>
      %72 = tpu.matmul %69, %71, %cst_60 {dimension_numbers = #tpu.dot_dimension_numbers<[1], [0], [0], [1], [0, 0, 1, 1], [], []>} : vector<8x4xbf16>, vector<4x8xbf16>, vector<8x8xf32> -> vector<8x8xf32>
      %73 = arith.addf %65, %72 : vector<8x8xf32>
      %c30_i32_61 = arith.constant 30 : i32
      %74 = arith.addi %arg4, %c30_i32_61 : i32
      %c0_62 = arith.constant 0 : index
      %75 = arith.index_cast %74 : i32 to index
      %c1_63 = arith.constant 1 : index
      %c0_64 = arith.constant 0 : index
      %76 = vector.load %arg1[%c0_62, %75, %c1_63, %c0_64] : memref<1x40x10x4xbf16, #tpu.memory_space<vmem>>, vector<1x1x8x4xbf16>
      %77 = vector.shape_cast %76 : vector<1x1x8x4xbf16> to vector<8x4xbf16>
      %c8 = arith.constant 8 : index
      %c0_65 = arith.constant 0 : index
      %c0_66 = arith.constant 0 : index
      %78 = vector.load %arg2[%c8, %c0_65, %c0_66] : memref<25x4x8xbf16, #tpu.memory_space<vmem>>, vector<1x4x8xbf16>
      %79 = vector.shape_cast %78 : vector<1x4x8xbf16> to vector<4x8xbf16>
      %cst_67 = arith.constant dense<0.000000e+00> : vector<8x8xf32>
      %80 = tpu.matmul %77, %79, %cst_67 {dimension_numbers = #tpu.dot_dimension_numbers<[1], [0], [0], [1], [0, 0, 1, 1], [], []>} : vector<8x4xbf16>, vector<4x8xbf16>, vector<8x8xf32> -> vector<8x8xf32>
      %81 = arith.addf %73, %80 : vector<8x8xf32>
      %c20_i32_68 = arith.constant 20 : i32
      %82 = arith.addi %arg4, %c20_i32_68 : i32
      %c0_69 = arith.constant 0 : index
      %83 = arith.index_cast %82 : i32 to index
      %c2_70 = arith.constant 2 : index
      %c0_71 = arith.constant 0 : index
      %84 = vector.load %arg1[%c0_69, %83, %c2_70, %c0_71] : memref<1x40x10x4xbf16, #tpu.memory_space<vmem>>, vector<1x1x8x4xbf16>
      %85 = vector.shape_cast %84 : vector<1x1x8x4xbf16> to vector<8x4xbf16>
      %c9 = arith.constant 9 : index
      %c0_72 = arith.constant 0 : index
      %c0_73 = arith.constant 0 : index
      %86 = vector.load %arg2[%c9, %c0_72, %c0_73] : memref<25x4x8xbf16, #tpu.memory_space<vmem>>, vector<1x4x8xbf16>
      %87 = vector.shape_cast %86 : vector<1x4x8xbf16> to vector<4x8xbf16>
      %cst_74 = arith.constant dense<0.000000e+00> : vector<8x8xf32>
      %88 = tpu.matmul %85, %87, %cst_74 {dimension_numbers = #tpu.dot_dimension_numbers<[1], [0], [0], [1], [0, 0, 1, 1], [], []>} : vector<8x4xbf16>, vector<4x8xbf16>, vector<8x8xf32> -> vector<8x8xf32>
      %89 = arith.addf %81, %88 : vector<8x8xf32>
      %c1_i32_75 = arith.constant 1 : i32
      %90 = arith.addi %arg4, %c1_i32_75 : i32
      %c0_76 = arith.constant 0 : index
      %91 = arith.index_cast %90 : i32 to index
      %c0_77 = arith.constant 0 : index
      %c0_78 = arith.constant 0 : index
      %92 = vector.load %arg1[%c0_76, %91, %c0_77, %c0_78] : memref<1x40x10x4xbf16, #tpu.memory_space<vmem>>, vector<1x1x8x4xbf16>
      %93 = vector.shape_cast %92 : vector<1x1x8x4xbf16> to vector<8x4xbf16>
      %c10 = arith.constant 10 : index
      %c0_79 = arith.constant 0 : index
      %c0_80 = arith.constant 0 : index
      %94 = vector.load %arg2[%c10, %c0_79, %c0_80] : memref<25x4x8xbf16, #tpu.memory_space<vmem>>, vector<1x4x8xbf16>
      %95 = vector.shape_cast %94 : vector<1x4x8xbf16> to vector<4x8xbf16>
      %cst_81 = arith.constant dense<0.000000e+00> : vector<8x8xf32>
      %96 = tpu.matmul %93, %95, %cst_81 {dimension_numbers = #tpu.dot_dimension_numbers<[1], [0], [0], [1], [0, 0, 1, 1], [], []>} : vector<8x4xbf16>, vector<4x8xbf16>, vector<8x8xf32> -> vector<8x8xf32>
      %97 = arith.addf %89, %96 : vector<8x8xf32>
      %c11_i32 = arith.constant 11 : i32
      %98 = arith.addi %arg4, %c11_i32 : i32
      %c0_82 = arith.constant 0 : index
      %99 = arith.index_cast %98 : i32 to index
      %c0_83 = arith.constant 0 : index
      %c0_84 = arith.constant 0 : index
      %100 = vector.load %arg1[%c0_82, %99, %c0_83, %c0_84] : memref<1x40x10x4xbf16, #tpu.memory_space<vmem>>, vector<1x1x8x4xbf16>
      %101 = vector.shape_cast %100 : vector<1x1x8x4xbf16> to vector<8x4xbf16>
      %c11 = arith.constant 11 : index
      %c0_85 = arith.constant 0 : index
      %c0_86 = arith.constant 0 : index
      %102 = vector.load %arg2[%c11, %c0_85, %c0_86] : memref<25x4x8xbf16, #tpu.memory_space<vmem>>, vector<1x4x8xbf16>
      %103 = vector.shape_cast %102 : vector<1x4x8xbf16> to vector<4x8xbf16>
      %cst_87 = arith.constant dense<0.000000e+00> : vector<8x8xf32>
      %104 = tpu.matmul %101, %103, %cst_87 {dimension_numbers = #tpu.dot_dimension_numbers<[1], [0], [0], [1], [0, 0, 1, 1], [], []>} : vector<8x4xbf16>, vector<4x8xbf16>, vector<8x8xf32> -> vector<8x8xf32>
      %105 = arith.addf %97, %104 : vector<8x8xf32>
      %c1_i32_88 = arith.constant 1 : i32
      %106 = arith.addi %arg4, %c1_i32_88 : i32
      %c0_89 = arith.constant 0 : index
      %107 = arith.index_cast %106 : i32 to index
      %c1_90 = arith.constant 1 : index
      %c0_91 = arith.constant 0 : index
      %108 = vector.load %arg1[%c0_89, %107, %c1_90, %c0_91] : memref<1x40x10x4xbf16, #tpu.memory_space<vmem>>, vector<1x1x8x4xbf16>
      %109 = vector.shape_cast %108 : vector<1x1x8x4xbf16> to vector<8x4xbf16>
      %c12 = arith.constant 12 : index
      %c0_92 = arith.constant 0 : index
      %c0_93 = arith.constant 0 : index
      %110 = vector.load %arg2[%c12, %c0_92, %c0_93] : memref<25x4x8xbf16, #tpu.memory_space<vmem>>, vector<1x4x8xbf16>
      %111 = vector.shape_cast %110 : vector<1x4x8xbf16> to vector<4x8xbf16>
      %cst_94 = arith.constant dense<0.000000e+00> : vector<8x8xf32>
      %112 = tpu.matmul %109, %111, %cst_94 {dimension_numbers = #tpu.dot_dimension_numbers<[1], [0], [0], [1], [0, 0, 1, 1], [], []>} : vector<8x4xbf16>, vector<4x8xbf16>, vector<8x8xf32> -> vector<8x8xf32>
      %113 = arith.addf %105, %112 : vector<8x8xf32>
      %c11_i32_95 = arith.constant 11 : i32
      %114 = arith.addi %arg4, %c11_i32_95 : i32
      %c0_96 = arith.constant 0 : index
      %115 = arith.index_cast %114 : i32 to index
      %c1_97 = arith.constant 1 : index
      %c0_98 = arith.constant 0 : index
      %116 = vector.load %arg1[%c0_96, %115, %c1_97, %c0_98] : memref<1x40x10x4xbf16, #tpu.memory_space<vmem>>, vector<1x1x8x4xbf16>
      %117 = vector.shape_cast %116 : vector<1x1x8x4xbf16> to vector<8x4xbf16>
      %c13 = arith.constant 13 : index
      %c0_99 = arith.constant 0 : index
      %c0_100 = arith.constant 0 : index
      %118 = vector.load %arg2[%c13, %c0_99, %c0_100] : memref<25x4x8xbf16, #tpu.memory_space<vmem>>, vector<1x4x8xbf16>
      %119 = vector.shape_cast %118 : vector<1x4x8xbf16> to vector<4x8xbf16>
      %cst_101 = arith.constant dense<0.000000e+00> : vector<8x8xf32>
      %120 = tpu.matmul %117, %119, %cst_101 {dimension_numbers = #tpu.dot_dimension_numbers<[1], [0], [0], [1], [0, 0, 1, 1], [], []>} : vector<8x4xbf16>, vector<4x8xbf16>, vector<8x8xf32> -> vector<8x8xf32>
      %121 = arith.addf %113, %120 : vector<8x8xf32>
      %c1_i32_102 = arith.constant 1 : i32
      %122 = arith.addi %arg4, %c1_i32_102 : i32
      %c0_103 = arith.constant 0 : index
      %123 = arith.index_cast %122 : i32 to index
      %c2_104 = arith.constant 2 : index
      %c0_105 = arith.constant 0 : index
      %124 = vector.load %arg1[%c0_103, %123, %c2_104, %c0_105] : memref<1x40x10x4xbf16, #tpu.memory_space<vmem>>, vector<1x1x8x4xbf16>
      %125 = vector.shape_cast %124 : vector<1x1x8x4xbf16> to vector<8x4xbf16>
      %c14 = arith.constant 14 : index
      %c0_106 = arith.constant 0 : index
      %c0_107 = arith.constant 0 : index
      %126 = vector.load %arg2[%c14, %c0_106, %c0_107] : memref<25x4x8xbf16, #tpu.memory_space<vmem>>, vector<1x4x8xbf16>
      %127 = vector.shape_cast %126 : vector<1x4x8xbf16> to vector<4x8xbf16>
      %cst_108 = arith.constant dense<0.000000e+00> : vector<8x8xf32>
      %128 = tpu.matmul %125, %127, %cst_108 {dimension_numbers = #tpu.dot_dimension_numbers<[1], [0], [0], [1], [0, 0, 1, 1], [], []>} : vector<8x4xbf16>, vector<4x8xbf16>, vector<8x8xf32> -> vector<8x8xf32>
      %129 = arith.addf %121, %128 : vector<8x8xf32>
      %c21_i32 = arith.constant 21 : i32
      %130 = arith.addi %arg4, %c21_i32 : i32
      %c0_109 = arith.constant 0 : index
      %131 = arith.index_cast %130 : i32 to index
      %c0_110 = arith.constant 0 : index
      %c0_111 = arith.constant 0 : index
      %132 = vector.load %arg1[%c0_109, %131, %c0_110, %c0_111] : memref<1x40x10x4xbf16, #tpu.memory_space<vmem>>, vector<1x1x8x4xbf16>
      %133 = vector.shape_cast %132 : vector<1x1x8x4xbf16> to vector<8x4xbf16>
      %c15 = arith.constant 15 : index
      %c0_112 = arith.constant 0 : index
      %c0_113 = arith.constant 0 : index
      %134 = vector.load %arg2[%c15, %c0_112, %c0_113] : memref<25x4x8xbf16, #tpu.memory_space<vmem>>, vector<1x4x8xbf16>
      %135 = vector.shape_cast %134 : vector<1x4x8xbf16> to vector<4x8xbf16>
      %cst_114 = arith.constant dense<0.000000e+00> : vector<8x8xf32>
      %136 = tpu.matmul %133, %135, %cst_114 {dimension_numbers = #tpu.dot_dimension_numbers<[1], [0], [0], [1], [0, 0, 1, 1], [], []>} : vector<8x4xbf16>, vector<4x8xbf16>, vector<8x8xf32> -> vector<8x8xf32>
      %137 = arith.addf %129, %136 : vector<8x8xf32>
      %c31_i32 = arith.constant 31 : i32
      %138 = arith.addi %arg4, %c31_i32 : i32
      %c0_115 = arith.constant 0 : index
      %139 = arith.index_cast %138 : i32 to index
      %c0_116 = arith.constant 0 : index
      %c0_117 = arith.constant 0 : index
      %140 = vector.load %arg1[%c0_115, %139, %c0_116, %c0_117] : memref<1x40x10x4xbf16, #tpu.memory_space<vmem>>, vector<1x1x8x4xbf16>
      %141 = vector.shape_cast %140 : vector<1x1x8x4xbf16> to vector<8x4xbf16>
      %c16 = arith.constant 16 : index
      %c0_118 = arith.constant 0 : index
      %c0_119 = arith.constant 0 : index
      %142 = vector.load %arg2[%c16, %c0_118, %c0_119] : memref<25x4x8xbf16, #tpu.memory_space<vmem>>, vector<1x4x8xbf16>
      %143 = vector.shape_cast %142 : vector<1x4x8xbf16> to vector<4x8xbf16>
      %cst_120 = arith.constant dense<0.000000e+00> : vector<8x8xf32>
      %144 = tpu.matmul %141, %143, %cst_120 {dimension_numbers = #tpu.dot_dimension_numbers<[1], [0], [0], [1], [0, 0, 1, 1], [], []>} : vector<8x4xbf16>, vector<4x8xbf16>, vector<8x8xf32> -> vector<8x8xf32>
      %145 = arith.addf %137, %144 : vector<8x8xf32>
      %c21_i32_121 = arith.constant 21 : i32
      %146 = arith.addi %arg4, %c21_i32_121 : i32
      %c0_122 = arith.constant 0 : index
      %147 = arith.index_cast %146 : i32 to index
      %c1_123 = arith.constant 1 : index
      %c0_124 = arith.constant 0 : index
      %148 = vector.load %arg1[%c0_122, %147, %c1_123, %c0_124] : memref<1x40x10x4xbf16, #tpu.memory_space<vmem>>, vector<1x1x8x4xbf16>
      %149 = vector.shape_cast %148 : vector<1x1x8x4xbf16> to vector<8x4xbf16>
      %c17 = arith.constant 17 : index
      %c0_125 = arith.constant 0 : index
      %c0_126 = arith.constant 0 : index
      %150 = vector.load %arg2[%c17, %c0_125, %c0_126] : memref<25x4x8xbf16, #tpu.memory_space<vmem>>, vector<1x4x8xbf16>
      %151 = vector.shape_cast %150 : vector<1x4x8xbf16> to vector<4x8xbf16>
      %cst_127 = arith.constant dense<0.000000e+00> : vector<8x8xf32>
      %152 = tpu.matmul %149, %151, %cst_127 {dimension_numbers = #tpu.dot_dimension_numbers<[1], [0], [0], [1], [0, 0, 1, 1], [], []>} : vector<8x4xbf16>, vector<4x8xbf16>, vector<8x8xf32> -> vector<8x8xf32>
      %153 = arith.addf %145, %152 : vector<8x8xf32>
      %c31_i32_128 = arith.constant 31 : i32
      %154 = arith.addi %arg4, %c31_i32_128 : i32
      %c0_129 = arith.constant 0 : index
      %155 = arith.index_cast %154 : i32 to index
      %c1_130 = arith.constant 1 : index
      %c0_131 = arith.constant 0 : index
      %156 = vector.load %arg1[%c0_129, %155, %c1_130, %c0_131] : memref<1x40x10x4xbf16, #tpu.memory_space<vmem>>, vector<1x1x8x4xbf16>
      %157 = vector.shape_cast %156 : vector<1x1x8x4xbf16> to vector<8x4xbf16>
      %c18 = arith.constant 18 : index
      %c0_132 = arith.constant 0 : index
      %c0_133 = arith.constant 0 : index
      %158 = vector.load %arg2[%c18, %c0_132, %c0_133] : memref<25x4x8xbf16, #tpu.memory_space<vmem>>, vector<1x4x8xbf16>
      %159 = vector.shape_cast %158 : vector<1x4x8xbf16> to vector<4x8xbf16>
      %cst_134 = arith.constant dense<0.000000e+00> : vector<8x8xf32>
      %160 = tpu.matmul %157, %159, %cst_134 {dimension_numbers = #tpu.dot_dimension_numbers<[1], [0], [0], [1], [0, 0, 1, 1], [], []>} : vector<8x4xbf16>, vector<4x8xbf16>, vector<8x8xf32> -> vector<8x8xf32>
      %161 = arith.addf %153, %160 : vector<8x8xf32>
      %c21_i32_135 = arith.constant 21 : i32
      %162 = arith.addi %arg4, %c21_i32_135 : i32
      %c0_136 = arith.constant 0 : index
      %163 = arith.index_cast %162 : i32 to index
      %c2_137 = arith.constant 2 : index
      %c0_138 = arith.constant 0 : index
      %164 = vector.load %arg1[%c0_136, %163, %c2_137, %c0_138] : memref<1x40x10x4xbf16, #tpu.memory_space<vmem>>, vector<1x1x8x4xbf16>
      %165 = vector.shape_cast %164 : vector<1x1x8x4xbf16> to vector<8x4xbf16>
      %c19 = arith.constant 19 : index
      %c0_139 = arith.constant 0 : index
      %c0_140 = arith.constant 0 : index
      %166 = vector.load %arg2[%c19, %c0_139, %c0_140] : memref<25x4x8xbf16, #tpu.memory_space<vmem>>, vector<1x4x8xbf16>
      %167 = vector.shape_cast %166 : vector<1x4x8xbf16> to vector<4x8xbf16>
      %cst_141 = arith.constant dense<0.000000e+00> : vector<8x8xf32>
      %168 = tpu.matmul %165, %167, %cst_141 {dimension_numbers = #tpu.dot_dimension_numbers<[1], [0], [0], [1], [0, 0, 1, 1], [], []>} : vector<8x4xbf16>, vector<4x8xbf16>, vector<8x8xf32> -> vector<8x8xf32>
      %169 = arith.addf %161, %168 : vector<8x8xf32>
      %c2_i32 = arith.constant 2 : i32
      %170 = arith.addi %arg4, %c2_i32 : i32
      %c0_142 = arith.constant 0 : index
      %171 = arith.index_cast %170 : i32 to index
      %c0_143 = arith.constant 0 : index
      %c0_144 = arith.constant 0 : index
      %172 = vector.load %arg1[%c0_142, %171, %c0_143, %c0_144] : memref<1x40x10x4xbf16, #tpu.memory_space<vmem>>, vector<1x1x8x4xbf16>
      %173 = vector.shape_cast %172 : vector<1x1x8x4xbf16> to vector<8x4xbf16>
      %c20 = arith.constant 20 : index
      %c0_145 = arith.constant 0 : index
      %c0_146 = arith.constant 0 : index
      %174 = vector.load %arg2[%c20, %c0_145, %c0_146] : memref<25x4x8xbf16, #tpu.memory_space<vmem>>, vector<1x4x8xbf16>
      %175 = vector.shape_cast %174 : vector<1x4x8xbf16> to vector<4x8xbf16>
      %cst_147 = arith.constant dense<0.000000e+00> : vector<8x8xf32>
      %176 = tpu.matmul %173, %175, %cst_147 {dimension_numbers = #tpu.dot_dimension_numbers<[1], [0], [0], [1], [0, 0, 1, 1], [], []>} : vector<8x4xbf16>, vector<4x8xbf16>, vector<8x8xf32> -> vector<8x8xf32>
      %177 = arith.addf %169, %176 : vector<8x8xf32>
      %c12_i32 = arith.constant 12 : i32
      %178 = arith.addi %arg4, %c12_i32 : i32
      %c0_148 = arith.constant 0 : index
      %179 = arith.index_cast %178 : i32 to index
      %c0_149 = arith.constant 0 : index
      %c0_150 = arith.constant 0 : index
      %180 = vector.load %arg1[%c0_148, %179, %c0_149, %c0_150] : memref<1x40x10x4xbf16, #tpu.memory_space<vmem>>, vector<1x1x8x4xbf16>
      %181 = vector.shape_cast %180 : vector<1x1x8x4xbf16> to vector<8x4xbf16>
      %c21 = arith.constant 21 : index
      %c0_151 = arith.constant 0 : index
      %c0_152 = arith.constant 0 : index
      %182 = vector.load %arg2[%c21, %c0_151, %c0_152] : memref<25x4x8xbf16, #tpu.memory_space<vmem>>, vector<1x4x8xbf16>
      %183 = vector.shape_cast %182 : vector<1x4x8xbf16> to vector<4x8xbf16>
      %cst_153 = arith.constant dense<0.000000e+00> : vector<8x8xf32>
      %184 = tpu.matmul %181, %183, %cst_153 {dimension_numbers = #tpu.dot_dimension_numbers<[1], [0], [0], [1], [0, 0, 1, 1], [], []>} : vector<8x4xbf16>, vector<4x8xbf16>, vector<8x8xf32> -> vector<8x8xf32>
      %185 = arith.addf %177, %184 : vector<8x8xf32>
      %c2_i32_154 = arith.constant 2 : i32
      %186 = arith.addi %arg4, %c2_i32_154 : i32
      %c0_155 = arith.constant 0 : index
      %187 = arith.index_cast %186 : i32 to index
      %c1_156 = arith.constant 1 : index
      %c0_157 = arith.constant 0 : index
      %188 = vector.load %arg1[%c0_155, %187, %c1_156, %c0_157] : memref<1x40x10x4xbf16, #tpu.memory_space<vmem>>, vector<1x1x8x4xbf16>
      %189 = vector.shape_cast %188 : vector<1x1x8x4xbf16> to vector<8x4xbf16>
      %c22 = arith.constant 22 : index
      %c0_158 = arith.constant 0 : index
      %c0_159 = arith.constant 0 : index
      %190 = vector.load %arg2[%c22, %c0_158, %c0_159] : memref<25x4x8xbf16, #tpu.memory_space<vmem>>, vector<1x4x8xbf16>
      %191 = vector.shape_cast %190 : vector<1x4x8xbf16> to vector<4x8xbf16>
      %cst_160 = arith.constant dense<0.000000e+00> : vector<8x8xf32>
      %192 = tpu.matmul %189, %191, %cst_160 {dimension_numbers = #tpu.dot_dimension_numbers<[1], [0], [0], [1], [0, 0, 1, 1], [], []>} : vector<8x4xbf16>, vector<4x8xbf16>, vector<8x8xf32> -> vector<8x8xf32>
      %193 = arith.addf %185, %192 : vector<8x8xf32>
      %c12_i32_161 = arith.constant 12 : i32
      %194 = arith.addi %arg4, %c12_i32_161 : i32
      %c0_162 = arith.constant 0 : index
      %195 = arith.index_cast %194 : i32 to index
      %c1_163 = arith.constant 1 : index
      %c0_164 = arith.constant 0 : index
      %196 = vector.load %arg1[%c0_162, %195, %c1_163, %c0_164] : memref<1x40x10x4xbf16, #tpu.memory_space<vmem>>, vector<1x1x8x4xbf16>
      %197 = vector.shape_cast %196 : vector<1x1x8x4xbf16> to vector<8x4xbf16>
      %c23 = arith.constant 23 : index
      %c0_165 = arith.constant 0 : index
      %c0_166 = arith.constant 0 : index
      %198 = vector.load %arg2[%c23, %c0_165, %c0_166] : memref<25x4x8xbf16, #tpu.memory_space<vmem>>, vector<1x4x8xbf16>
      %199 = vector.shape_cast %198 : vector<1x4x8xbf16> to vector<4x8xbf16>
      %cst_167 = arith.constant dense<0.000000e+00> : vector<8x8xf32>
      %200 = tpu.matmul %197, %199, %cst_167 {dimension_numbers = #tpu.dot_dimension_numbers<[1], [0], [0], [1], [0, 0, 1, 1], [], []>} : vector<8x4xbf16>, vector<4x8xbf16>, vector<8x8xf32> -> vector<8x8xf32>
      %201 = arith.addf %193, %200 : vector<8x8xf32>
      %c2_i32_168 = arith.constant 2 : i32
      %202 = arith.addi %arg4, %c2_i32_168 : i32
      %c0_169 = arith.constant 0 : index
      %203 = arith.index_cast %202 : i32 to index
      %c2_170 = arith.constant 2 : index
      %c0_171 = arith.constant 0 : index
      %204 = vector.load %arg1[%c0_169, %203, %c2_170, %c0_171] : memref<1x40x10x4xbf16, #tpu.memory_space<vmem>>, vector<1x1x8x4xbf16>
      %205 = vector.shape_cast %204 : vector<1x1x8x4xbf16> to vector<8x4xbf16>
      %c24 = arith.constant 24 : index
      %c0_172 = arith.constant 0 : index
      %c0_173 = arith.constant 0 : index
      %206 = vector.load %arg2[%c24, %c0_172, %c0_173] : memref<25x4x8xbf16, #tpu.memory_space<vmem>>, vector<1x4x8xbf16>
      %207 = vector.shape_cast %206 : vector<1x4x8xbf16> to vector<4x8xbf16>
      %cst_174 = arith.constant dense<0.000000e+00> : vector<8x8xf32>
      %208 = tpu.matmul %205, %207, %cst_174 {dimension_numbers = #tpu.dot_dimension_numbers<[1], [0], [0], [1], [0, 0, 1, 1], [], []>} : vector<8x4xbf16>, vector<4x8xbf16>, vector<8x8xf32> -> vector<8x8xf32>
      %209 = arith.addf %201, %208 : vector<8x8xf32>
      %cst_175 = arith.constant dense<0.000000e+00> : vector<8xf32>
      %210 = vector.multi_reduction <add>, %209, %cst_175 [0] : vector<8x8xf32> to vector<8xf32>
      %211 = vector.shape_cast %210 : vector<8xf32> to vector<1x8xf32>
      %212 = arith.addf %arg5, %211 : vector<1x8xf32>
      %213 = arith.mulf %209, %209 : vector<8x8xf32>
      %cst_176 = arith.constant dense<0.000000e+00> : vector<8xf32>
      %214 = vector.multi_reduction <add>, %213, %cst_176 [0] : vector<8x8xf32> to vector<8xf32>
      %215 = vector.shape_cast %214 : vector<8xf32> to vector<1x8xf32>
      %216 = arith.addf %arg6, %215 : vector<1x8xf32>
      scf.yield %212, %216 : vector<1x8xf32>, vector<1x8xf32>
    }
    %c8_i32_0 = arith.constant 8 : i32
    %c0 = arith.constant 0 : index
    %c0_1 = arith.constant 0 : index
    %c0_2 = arith.constant 0 : index
    %3 = vector.load %arg3[%c0, %c0_1, %c0_2] : memref<1x2x8xf32, #tpu.memory_space<vmem>>, vector<1x1x8xf32>
    %4 = vector.shape_cast %3 : vector<1x1x8xf32> to vector<1x8xf32>
    %5 = vector.shape_cast %2#0 : vector<1x8xf32> to vector<1x1x8xf32>
    tpu.vector_store %arg3[%c0, %c0_1, %c0_2], %5 {strides = array<i32>} : memref<1x2x8xf32, #tpu.memory_space<vmem>>, vector<1x1x8xf32>,
    %c0_3 = arith.constant 0 : index
    %c1 = arith.constant 1 : index
    %c0_4 = arith.constant 0 : index
    %6 = vector.load %arg3[%c0_3, %c1, %c0_4] : memref<1x2x8xf32, #tpu.memory_space<vmem>>, vector<1x1x8xf32>
    %7 = vector.shape_cast %6 : vector<1x1x8xf32> to vector<1x8xf32>
    %8 = vector.shape_cast %2#1 : vector<1x8xf32> to vector<1x1x8xf32>
    tpu.vector_store %arg3[%c0_3, %c1, %c0_4], %8 {strides = array<i32>} : memref<1x2x8xf32, #tpu.memory_space<vmem>>, vector<1x1x8xf32>,
    return
  }
  func.func @transform_0(%arg0: i32) -> (i32, i32, i32, i32) {
    %c0_i32 = arith.constant 0 : i32
    %c0_i32_0 = arith.constant 0 : i32
    %c0_i32_1 = arith.constant 0 : i32
    %c0_i32_2 = arith.constant 0 : i32
    return %arg0, %c0_i32, %c0_i32_0, %c0_i32_1 : i32, i32, i32, i32
  }
  func.func @transform_1(%arg0: i32) -> (i32, i32, i32) {
    %c0_i32 = arith.constant 0 : i32
    %c0_i32_0 = arith.constant 0 : i32
    %c0_i32_1 = arith.constant 0 : i32
    %c0_i32_2 = arith.constant 0 : i32
    return %c0_i32, %c0_i32_0, %c0_i32_1 : i32, i32, i32
  }
  func.func @transform_2(%arg0: i32) -> (i32, i32, i32) {
    %c0_i32 = arith.constant 0 : i32
    %c0_i32_0 = arith.constant 0 : i32
    %c0_i32_1 = arith.constant 0 : i32
    return %arg0, %c0_i32, %c0_i32_0 : i32, i32, i32
  }
}

</mosaic_0001>

<bundles_post_ra>
// kernel: tpu_custom_call.1
= control target key start
LH: loop header
LB: loop body
LE: loop exit
PB: predicated region body
PF: predicated region fallthrough
CT: control target
= control target key end

     0   :  { %7 = vsyncpa [#allocation3], 0  ;;  %s2581_s0 = inlined_call_operand.vmem [shape: bf16[2,40,10,4], index: 0, kind: input, shape index: {}]   ;;  %s2582_s1 = inlined_call_operand.vmem [shape: bf16[25,4,8], index: 1, kind: input, shape index: {}]   ;;  %s2583_s2 = inlined_call_operand.hbm [shape: f32[2,2,8], index: 2, kind: output, shape index: {}]  }
   0x1   :  { %9 = vsyncpa [#allocation3 + $0x1], 0  ;;  %s2225_s9 = smov 0   ;;  %s2227_s10 = smov 0  }
   0x2   :  { %s2229_s11 = smov 0   ;;  %s2231_s12 = smov 0  }
   0x3 LB: > { %s2246_s13 = sadd.s32 4294967295, %s2193_s12   ;;  %s1723_s14 = sadd.s32 4294967294, %s2193_s12   ;;  %s2193_s12 = sphi %s2231_s12, %s2591_s12   ;;  %s2189_s11 = sphi %s2229_s11, %s2590_s11   ;;  %s2185_s10 = sphi %s2227_s10, %s2589_s10   ;;  %s2181_s9 = sphi %s2225_s9, %s2588_s9  }
   0x4   : > { %s2250_s15 = sadd.s32 1, %s2193_s12   ;;  %s69_s16 = sadd.s32 1, %s2189_s11 }
   0x5   : > { %s66_s17 = ssub.s32 %s2193_s12, %s2250_s15  ;;  %p79_p0 = scmp.ne.s32.totalorder %s2189_s11, %s2185_s10 }
   0x6   : > { %p67_p1 = scmp.eq.s32.totalorder %s66_s17, 0  ;;  %p80_p2 = scmp.eq.s32.totalorder %s2246_s13, 1 }
   0x7   : > { %p85_p3 = scmp.ne.s32.totalorder %s2185_s10, %s2181_s9  ;;  %p86_p4 = scmp.eq.s32.totalorder %s1723_s14, 1 }
   0x8   : > { %s2261_s18 = scalar_select %p67_p1, %s2189_s11, %s69_s16  }
   0x9   : > { %p2263_p5 = por %p80_p2, %p79_p0  ;;  %p2267_p6 = por %p86_p4, %p85_p3 }
   0xa   : > { %p1726_p7 = scmp.ge.s32.totalorder %s2193_s12, 1  ;;  %p115_p8 = scmp.lt.s32.totalorder %s2193_s12, 3 }
   0xc   : > { %p116_p9 = pnand %p1726_p7, %p115_p8 }
   0xd   : > { %s134_s21 = sand.u32 (!%p116_p9), 1, %s2185_s10   ;;  %p137_p10 = scmp.lt.s32.totalorder (!%p116_p9), %s2246_s13, 1 }
   0xe   : > { %119 = sbr.rel (%p116_p9) target bundleno = 350 (0x15e), region = 28  ;;  %s1727_s22 = sshll.u32 (!%p116_p9), %s134_s21, 1 }
   0xf   : > { %s2283_s28 = scalar_lea.vmem (!%p116_p9), [#allocation2], %s1727_s22  ;;  %s2289_s29 = smov (!%p116_p9), 0  }
  0x13   : > { %s138_s23 = scalar_select %p137_p10, %s2246_s13, 1  ;;  %v2285_v0 = vmov 0.0   ;;  %v2287_v1 = vmov 0.0  }
  0x15   : > { %s2040_s24 = smul.u32 320, %s138_s23 }
  0x17   : > { %s2281_s27 = scalar_lea.vmem %s2581_s0, %s2040_s24 }
  0x18 LB: >> { %v1733_v2 = vld [vmem:[%s2582_s1 + $0x2] sm:$0x3]  ;;  %vm167_vm0 = vcmask 1041408   ;;  %v155_v3 = vld [vmem:[%s2582_s1] sm:$0x3]  ;;  %v2207_v4 = vmov 0.0   ;;  %s2205_s29 = sphi %s2289_s29, %s148_s29   ;;  %v2201_v1 = vphi %v2287_v1, %v2587_v1   ;;  %v2197_v0 = vphi %v2285_v0, %v2586_v0  }
  0x19   : >> { %1890 = vmatprep.subr.bf16.mxu0 %v2207_v4  ;;  %v169_v5 = vsel %vm167_vm0, %v1733_v2, 0  ;;  %1896 = vmatprep.subr.bf16.mxu1 %v2207_v4  ;;  %v215_v6 = vsel %vm167_vm0, %v155_v3, 0  ;;  %v1736_v7 = vld [vmem:[%s2582_s1 + $0x4] sm:$0x3]  ;;  %s1839_s8 = sshll.u32 %s2205_s29, 3  ;;  %vm163_vm1 = vcmask 31744  }
  0x1a   : >> { %1891 = vmatpush3.bf16.msra.mxu0 %v169_v5  ;;  %1897 = vmatpush3.bf16.msra.mxu1 %v215_v6  ;;  %v1741_v8 = vld [vmem:[%s2582_s1 + $0x6] sm:$0x3]  ;;  %vm2208_vm2 = vmmov 0   ;;  %s2320_s17 = scalar_lea.vmem %s2281_s27, %s1839_s8  ;;  %v277_v9 = vsel %vm167_vm0, %v1736_v7, 0  ;;  %v1744_v21 = vld [vmem:[%s2582_s1 + $0x8] sm:$0x3] }
  0x1b   : >> { %1892 = vmatprep.mubr.msk.bf16.mxu0 %vm2208_vm2, %v2207_v4  ;;  %1898 = vmatprep.mubr.msk.bf16.mxu1 %vm2208_vm2, %v2207_v4  ;;  %v340_v10 = vsel %vm167_vm0, %v1741_v8, 0  ;;  %v1732_v11 = vld [vmem:[%s2320_s17 + $0x50] sm:$0xf]  ;;  %v154_v12 = vld [vmem:[%s2320_s17] sm:$0xf]  ;;  %v394_v30 = vsel %vm167_vm0, %v1744_v21, 0 }
  0x1c   : >> { %1902 = vmatprep.subr.bf16.mxu0 %v2207_v4  ;;  %1908 = vmatprep.subr.bf16.mxu1 %v2207_v4  ;;  %v257_v13 = vld [vmem:[%s2320_s17] sm:$0xf]  ;;  %v258_v14 = vld [vmem:[%s2320_s17 + $0x4] sm:$0x1]  ;;  %v2107_v16 = vld [vmem:[%s2320_s17 + $0x50] sm:$0x1f]  }
  0x1d   : >> { %1893 = vmatmul.mubr.msk.bf16.vlgmr.msra.gmra.mxu0 %vm163_vm1, %v1732_v11  ;;  %1899 = vmatmul.mubr.msk.bf16.vlgmr.msra.gmra.mxu1 %vm163_vm1, %v154_v12  ;;  %v1737_v15 = vcombine.low %v257_v13, %v258_v14  ;;  %v330_v19 = vshrl.u32 %v2107_v16, 16  ;;  %v332_v20 = vshll.u32 %v2107_v16, 16  ;;  %v1749_v22 = vld [vmem:[%s2582_s1 + $0xa] sm:$0x3]  ;;  %v383_v25 = vld [vmem:[%s2320_s17] sm:$0xe] }
  0x1e   : >> { %1903 = vmatpush3.bf16.msra.mxu0 %v277_v9  ;;  %1909 = vmatpush3.bf16.msra.mxu1 %v340_v10  ;;  %v1755_v26 = vld [vmem:[%s2320_s17 + $0xa0] sm:$0xf]  ;;  %v1756_v27 = vld [vmem:[%s2320_s17 + $0xa4] sm:$0x1]  ;;  %v448_v31 = vsel %vm167_vm0, %v1749_v22, 0  ;;  %v1745_v32 = vcombine.low %v383_v25, %v258_v14  ;;  %vm1589_vm3 = vcmask 64512  }
  0x1f   : >> { %1904 = vmatprep.mubr.msk.bf16.mxu0 %vm2208_vm2, %v2207_v4  ;;  %1910 = vmatprep.mubr.msk.bf16.mxu1 %vm2208_vm2, %v2207_v4  ;;  %v267_v17 = vshrl.u32 %v1737_v15, 16  ;;  %v269_v18 = vshll.u32 %v1737_v15, 16  ;;  %v334_v24 = vrot.slane %v332_v20, 1  ;;  %v1758_v33 = vcombine.low %v1755_v26, %v1756_v27  ;;  %v1753_v34 = vld [vmem:[%s2582_s1 + $0xc] sm:$0x3]  ;;  %s148_s29 = sadd.s32 1, %s2205_s29  }
  0x20   : >> { %1914 = vmatprep.subr.bf16.mxu0 %v2207_v4  ;;  %1920 = vmatprep.subr.bf16.mxu1 %v2207_v4  ;;  %v1757_v35 = vld [vmem:[%s2582_s1 + $0xe] sm:$0x3]  ;;  %v389_v36 = vrot.slane %v1745_v32, 1  ;;  %v1748_v38 = vld [vmem:[%s2320_s17 + $0xa0] sm:$0xf]  ;;  %v502_v39 = vsel %vm167_vm0, %v1753_v34, 0 }
  0x21   : >> { %v271_v23 = vrot.slane %v269_v18, 1  ;;  %v335_v29 = vor.u32 %v334_v24, %v330_v19  ;;  %v557_v37 = vshll.u32 %v1758_v33, 16  ;;  %v565_v40 = vsel %vm167_vm0, %v1757_v35, 0  ;;  %v2110_v43 = vld [vmem:[%s2320_s17 + $0xf0] sm:$0x1f]   ;;  %p145_p11 = scmp.ge.s32.totalorder %s148_s29, 8  }
  0x22   : >> { %v555_v41 = vshrl.u32 %v1758_v33, 16  ;;  %v1762_v44 = vld [vmem:[%s2582_s1 + $0x10] sm:$0x3]  ;;  %v1766_v45 = vld [vmem:[%s2582_s1 + $0x12] sm:$0x3]  ;;  %v620_v47 = vshll.u32 %v2110_v43, 16 }
  0x23   : >> { %v272_v28 = vor.u32 %v271_v23, %v267_v17  ;;  %v559_v42 = vrot.slane %v557_v37, 1  ;;  %v1752_v48 = vld [vmem:[%s2320_s17 + $0xf0] sm:$0xf]  ;;  %v1765_v49 = vld [vmem:[%s2320_s17 + $0xa0] sm:$0xe]  ;;  %v628_v50 = vsel %vm167_vm0, %v1762_v44, 0 }
  0x24   : >> { %v682_v51 = vsel %vm167_vm0, %v1766_v45, 0  ;;  %v618_v52 = vshrl.u32 %v2110_v43, 16  ;;  %v622_v53 = vrot.slane %v620_v47, 1  ;;  %v1767_v54 = vcombine.low %v1765_v49, %v1756_v27  ;;  %v1771_v55 = vld [vmem:[%s2582_s1 + $0x14] sm:$0x3]  ;;  %s1624_s25 = sshll.u32 (%p145_p11), %s2283_s28, 4  ;;  %s1625_s25 = int_to_ptr.vmem [resolvable:$true] %s1624_s25 }
  0x25   : >> { %1905 = vmatmul.mubr.msk.bf16.vlgmr.msra.gmra.mxu0 %vm163_vm1, %v272_v28  ;;  %1911 = vmatmul.mubr.msk.bf16.vlgmr.msra.gmra.mxu1 %vm163_vm1, %v335_v29  ;;  %v560_v46 = vor.u32 %v559_v42, %v555_v41  ;;  %v1775_v56 = vld [vmem:[%s2582_s1 + $0x16] sm:$0x3]  ;;  %v1777_v59 = vld [vmem:[%s2320_s17 + $0x8] sm:$0xf]  ;;  %v1778_v60 = vld [vmem:[%s2320_s17 + $0xc] sm:$0x1] }
  0x26   : >> { %1915 = vmatpush3.bf16.msra.mxu0 %v394_v30  ;;  %1921 = vmatpush3.bf16.msra.mxu1 %v448_v31  ;;  %v623_v57 = vor.u32 %v622_v53, %v618_v52  ;;  %v677_v58 = vrot.slane %v1767_v54, 1  ;;  %v736_v61 = vsel %vm167_vm0, %v1771_v55, 0  ;;  %v790_v62 = vsel %vm167_vm0, %v1775_v56, 0  ;;  %v2113_v2 = vld [vmem:[%s2320_s17 + $0x58] sm:$0x1f]   ;;  %s1611_s26 = scalar_lea.sflag (%p145_p11), [#allocation3], %s134_s21 }
  0x27   : >> { %1916 = vmatprep.mubr.msk.bf16.mxu0 %vm2208_vm2, %v2207_v4  ;;  %1922 = vmatprep.mubr.msk.bf16.mxu1 %vm2208_vm2, %v2207_v4  ;;  %v1780_v63 = vcombine.low %v1777_v59, %v1778_v60  ;;  %v1779_v3 = vld [vmem:[%s2582_s1 + $0x18] sm:$0x3]  ;;  %v1784_v5 = vld [vmem:[%s2582_s1 + $0x1a] sm:$0x3]  ;;  %v908_v7 = vshll.u32 %v2113_v2, 16  ;;  %v906_v14 = vshrl.u32 %v2113_v2, 16 }
  0x28   : >> { %1926 = vmatprep.subr.bf16.mxu0 %v2207_v4  ;;  %1932 = vmatprep.subr.bf16.mxu1 %v2207_v4  ;;  %v1770_v8 = vld [vmem:[%s2320_s17 + $0x8] sm:$0xf]  ;;  %v1774_v9 = vld [vmem:[%s2320_s17 + $0x58] sm:$0xf]  ;;  %v853_v10 = vsel %vm167_vm0, %v1779_v3, 0  ;;  %v916_v11 = vsel %vm167_vm0, %v1784_v5, 0 }
  0x29   : >> { %v845_v6 = vshll.u32 %v1780_v63, 16  ;;  %v843_v12 = vshrl.u32 %v1780_v63, 16  ;;  %v910_v15 = vrot.slane %v908_v7, 1  ;;  %v1788_v16 = vld [vmem:[%s2582_s1 + $0x1c] sm:$0x3]  ;;  %vm1607_vm4 = vcmask (%p145_p11), 57344  }
  0x2a   : >> { %v1793_v17 = vld [vmem:[%s2582_s1 + $0x1e] sm:$0x3]  ;;  %v1787_v20 = vld [vmem:[%s2320_s17 + $0x8] sm:$0xe]  ;;  %v1800_v22 = vld [vmem:[%s2320_s17 + $0xac] sm:$0x1] }
  0x2b   : >> { %v847_v13 = vrot.slane %v845_v6, 1  ;;  %v911_v19 = vor.u32 %v910_v15, %v906_v14  ;;  %v1799_v21 = vld [vmem:[%s2320_s17 + $0xa8] sm:$0xf]  ;;  %v970_v23 = vsel %vm167_vm0, %v1788_v16, 0  ;;  %v1024_v24 = vsel %vm167_vm0, %v1793_v17, 0  ;;  %s2121_s29 = scalar_lea.vmem (%p145_p11), %s1625_s25, 32 }
  0x2c   : >> { %v1789_v25 = vcombine.low %v1787_v20, %v1778_v60  ;;  %v1802_v26 = vcombine.low %v1799_v21, %v1800_v22  ;;  %v1797_v27 = vld [vmem:[%s2582_s1 + $0x20] sm:$0x3]  ;;  %v1801_v28 = vld [vmem:[%s2582_s1 + $0x22] sm:$0x3]  ;;  %v1792_v31 = vld [vmem:[%s2320_s17 + $0xa8] sm:$0xf]  ;;  %p2122_p12 = scmp.ne.s32.totalorder (%p145_p11), %s1625_s25, %s2121_s29 }
  0x2d   : >> { %1917 = vmatmul.mubr.msk.bf16.vlgmr.msra.gmra.mxu0 %vm163_vm1, %v389_v36  ;;  %1923 = vmatmul.mubr.msk.bf16.vlgmr.msra.gmra.mxu1 %vm163_vm1, %v1748_v38  ;;  %v848_v18 = vor.u32 %v847_v13, %v843_v12  ;;  %v1078_v32 = vsel %vm167_vm0, %v1797_v27, 0  ;;  %v1141_v33 = vsel %vm167_vm0, %v1801_v28, 0  ;;  %v2116_v36 = vld [vmem:[%s2320_s17 + $0xf8] sm:$0x1f]   ;;  %v1806_v37 = vld [vmem:[%s2582_s1 + $0x24] sm:$0x3] }
  0x2e   : >> { %1927 = vmatpush3.bf16.msra.mxu0 %v502_v39  ;;  %1933 = vmatpush3.bf16.msra.mxu1 %v565_v40  ;;  %v965_v29 = vrot.slane %v1789_v25, 1  ;;  %v1133_v30 = vshll.u32 %v1802_v26, 16  ;;  %v1131_v34 = vshrl.u32 %v1802_v26, 16  ;;  %v1810_v38 = vld [vmem:[%s2582_s1 + $0x26] sm:$0x3]  ;;  %v1196_v40 = vshll.u32 %v2116_v36, 16  ;;  %p2123_p13 = pnand (%p145_p11), %p2122_p12, %p2263_p5 }
  0x2f   : >> { %1928 = vmatprep.mubr.msk.bf16.mxu0 %vm2208_vm2, %v2207_v4  ;;  %1934 = vmatprep.mubr.msk.bf16.mxu1 %vm2208_vm2, %v2207_v4  ;;  %v1796_v41 = vld [vmem:[%s2320_s17 + $0xf8] sm:$0xf]  ;;  %v1809_v42 = vld [vmem:[%s2320_s17 + $0xa8] sm:$0xe]  ;;  %v1204_v43 = vsel %vm167_vm0, %v1806_v37, 0  ;;  %v1258_v44 = vsel %vm167_vm0, %v1810_v38, 0 }
  0x30   : >> { %1938 = vmatprep.subr.bf16.mxu0 %v2207_v4  ;;  %1944 = vmatprep.subr.bf16.mxu1 %v2207_v4  ;;  %v1135_v35 = vrot.slane %v1133_v30, 1  ;;  %v1194_v45 = vshrl.u32 %v2116_v36, 16  ;;  %v1811_v47 = vcombine.low %v1809_v42, %v1800_v22  ;;  %v1819_v49 = vld [vmem:[%s2582_s1 + $0x2a] sm:$0x3]  ;;  %v1821_v52 = vld [vmem:[%s2320_s17 + $0x10] sm:$0xf]  ;;  %p2124_p0 = pneg (%p145_p11), %p2123_p13 }
  0x31   : >> { %v1822_v53 = vld [vmem:[%s2320_s17 + $0x14] sm:$0x1]  ;;  %v1366_v55 = vsel %vm167_vm0, %v1819_v49, 0  ;;  %v1828_v59 = vld [vmem:[%s2582_s1 + $0x2e] sm:$0x3]  ;;  %s2209_s27 = smov (%p145_p11), [#allocation2]  }
  0x32   : >> { %v1136_v39 = vor.u32 %v1135_v35, %v1131_v34  ;;  %v1824_v56 = vcombine.low %v1821_v52, %v1822_v53  ;;  %v1818_v63 = vld [vmem:[%s2320_s17 + $0x60] sm:$0xf]  ;;  %v1492_v3 = vsel %vm167_vm0, %v1828_v59, 0  ;;  %v1831_v12 = vld [vmem:[%s2320_s17 + $0x10] sm:$0xe]  ;;  %s2125_s30 = sshll.u32 (%p145_p11), %s2209_s27, 4  ;;  %s2126_s30 = int_to_ptr.vmem [resolvable:$false] %s2125_s30 }
  0x33   : >> { %v1833_v14 = vcombine.low %v1831_v12, %v1822_v53  ;;  %s2127_s3 = scalar_lea.vmem (%p145_p11), %s2126_s30, 64  ;;  %p2128_p1 = scmp.lt.s32.totalorder (%p145_p11), %s1625_s25, %s2126_s30 }
  0x34   : >> { %v1421_v60 = vshll.u32 %v1824_v56, 16  ;;  %v1419_v5 = vshrl.u32 %v1824_v56, 16  ;;  %p2129_p2 = scmp.lt.s32.totalorder (%p145_p11), %s2127_s3, %s2121_s29 }
  0x35   : >> { %1929 = vmatmul.mubr.msk.bf16.vlgmr.msra.gmra.mxu0 %vm163_vm1, %v1752_v48  ;;  %1935 = vmatmul.mubr.msk.bf16.vlgmr.msra.gmra.mxu1 %vm163_vm1, %v560_v46  ;;  %v1198_v46 = vrot.slane %v1196_v40, 1  ;;  %v1815_v48 = vld [vmem:[%s2582_s1 + $0x28] sm:$0x3]  ;;  %v1541_v15 = vrot.slane %v1833_v14, 1 }
  0x36   : >> { %1939 = vmatpush3.bf16.msra.mxu0 %v628_v50  ;;  %1945 = vmatpush3.bf16.msra.mxu1 %v682_v51  ;;  %v1253_v51 = vrot.slane %v1811_v47, 1  ;;  %v1312_v54 = vsel %vm167_vm0, %v1815_v48, 0  ;;  %v1423_v6 = vrot.slane %v1421_v60, 1  ;;  %p2130_p3 = por (%p145_p11), %p2129_p2, %p2128_p1 }
  0x37   : >> { %1940 = vmatprep.mubr.msk.bf16.mxu0 %vm2208_vm2, %v2207_v4  ;;  %1946 = vmatprep.mubr.msk.bf16.mxu1 %vm2208_vm2, %v2207_v4  ;;  %v1199_v50 = vor.u32 %v1198_v46, %v1194_v45 }
  0x38   : >> { %1950 = vmatprep.subr.bf16.mxu0 %v2207_v4  ;;  %1956 = vmatprep.subr.bf16.mxu1 %v2207_v4  ;;  %p2131_p4 = pnand (%p145_p11), %p2130_p3, %p2124_p0 }
  0x3d   : >> { %1941 = vmatmul.mubr.msk.bf16.vlgmr.msra.gmra.mxu0 %vm163_vm1, %v623_v57  ;;  %1947 = vmatmul.mubr.msk.bf16.vlgmr.msra.gmra.mxu1 %vm163_vm1, %v677_v58  ;;  %v2119_v57 = vld [vmem:[%s2320_s17 + $0x60] sm:$0x1f]   ;;  %v1823_v58 = vld [vmem:[%s2582_s1 + $0x2c] sm:$0x3] }
  0x3e   : >> { %1951 = vmatpush3.bf16.msra.mxu0 %v736_v61  ;;  %1957 = vmatpush3.bf16.msra.mxu1 %v790_v62  ;;  %v1484_v61 = vshll.u32 %v2119_v57, 16  ;;  %v1814_v62 = vld [vmem:[%s2320_s17 + $0x10] sm:$0xf]  ;;  %v1429_v2 = vsel %vm167_vm0, %v1823_v58, 0  ;;  %v1482_v7 = vshrl.u32 %v2119_v57, 16  ;;  %s1836_s17 = sshll.u32 (%p145_p11), %s2246_s13, 5 }
  0x3f   : >> { %1952 = vmatprep.mubr.msk.bf16.mxu0 %vm2208_vm2, %v2207_v4  ;;  %1958 = vmatprep.mubr.msk.bf16.mxu1 %vm2208_vm2, %v2207_v4  ;;  %s1622_s24 = scalar_lea.hbm (%p145_p11), %s2583_s2, %s1836_s17 }
  0x40   : >> { %1962 = vmatprep.subr.bf16.mxu0 %v2207_v4  ;;  %1968 = vmatprep.subr.bf16.mxu1 %v2207_v4 }
  0x45   : >> { %1953 = vmatmul.mubr.msk.bf16.vlgmr.msra.gmra.mxu0 %vm163_vm1, %v1770_v8  ;;  %1959 = vmatmul.mubr.msk.bf16.vlgmr.msra.gmra.mxu1 %vm163_vm1, %v1774_v9  ;;  %v1486_v8 = vrot.slane %v1484_v61, 1  ;;  %v1832_v9 = vld [vmem:[%s2582_s1 + $0x30] sm:$0x3] }
  0x46   : >> { %1963 = vmatpush3.bf16.msra.mxu0 %v853_v10  ;;  %1969 = vmatpush3.bf16.msra.mxu1 %v916_v11  ;;  %v1424_v10 = vor.u32 %v1423_v6, %v1419_v5  ;;  %v1546_v13 = vsel %vm167_vm0, %v1832_v9, 0 }
  0x47   : >> { %1964 = vmatprep.mubr.msk.bf16.mxu0 %vm2208_vm2, %v2207_v4  ;;  %1970 = vmatprep.mubr.msk.bf16.mxu1 %vm2208_vm2, %v2207_v4  ;;  %v1487_v11 = vor.u32 %v1486_v8, %v1482_v7 }
  0x48   : >> { %1974 = vmatprep.subr.bf16.mxu0 %v2207_v4  ;;  %1980 = vmatprep.subr.bf16.mxu1 %v2207_v4 }
  0x4d   : >> { %1965 = vmatmul.mubr.msk.bf16.vlgmr.msra.gmra.mxu0 %vm163_vm1, %v848_v18  ;;  %1971 = vmatmul.mubr.msk.bf16.vlgmr.msra.gmra.mxu1 %vm163_vm1, %v911_v19 }
  0x4e   : >> { %1975 = vmatpush3.bf16.msra.mxu0 %v970_v23  ;;  %1981 = vmatpush3.bf16.msra.mxu1 %v1024_v24 }
  0x4f   : >> { %1976 = vmatprep.mubr.msk.bf16.mxu0 %vm2208_vm2, %v2207_v4  ;;  %1982 = vmatprep.mubr.msk.bf16.mxu1 %vm2208_vm2, %v2207_v4 }
  0x50   : >> { %1986 = vmatprep.subr.bf16.mxu0 %v2207_v4  ;;  %1992 = vmatprep.subr.bf16.mxu1 %v2207_v4 }
  0x55   : >> { %1977 = vmatmul.mubr.msk.bf16.vlgmr.msra.gmra.mxu0 %vm163_vm1, %v965_v29  ;;  %1983 = vmatmul.mubr.msk.bf16.vlgmr.msra.gmra.mxu1 %vm163_vm1, %v1792_v31 }
  0x56   : >> { %1987 = vmatpush3.bf16.msra.mxu0 %v1078_v32  ;;  %1993 = vmatpush3.bf16.msra.mxu1 %v1141_v33 }
  0x57   : >> { %1988 = vmatprep.mubr.msk.bf16.mxu0 %vm2208_vm2, %v2207_v4  ;;  %1994 = vmatprep.mubr.msk.bf16.mxu1 %vm2208_vm2, %v2207_v4 }
  0x58   : >> { %1998 = vmatprep.subr.bf16.mxu0 %v2207_v4  ;;  %2004 = vmatprep.subr.bf16.mxu1 %v2207_v4 }
  0x5d   : >> { %1989 = vmatmul.mubr.msk.bf16.vlgmr.msra.gmra.mxu0 %vm163_vm1, %v1796_v41  ;;  %1995 = vmatmul.mubr.msk.bf16.vlgmr.msra.gmra.mxu1 %vm163_vm1, %v1136_v39 }
  0x5e   : >> { %1999 = vmatpush3.bf16.msra.mxu0 %v1204_v43  ;;  %2005 = vmatpush3.bf16.msra.mxu1 %v1258_v44 }
  0x5f   : >> { %2000 = vmatprep.mubr.msk.bf16.mxu0 %vm2208_vm2, %v2207_v4  ;;  %2006 = vmatprep.mubr.msk.bf16.mxu1 %vm2208_vm2, %v2207_v4 }
  0x60   : >> { %2010 = vmatprep.subr.bf16.mxu0 %v2207_v4  ;;  %2016 = vmatprep.subr.bf16.mxu1 %v2207_v4 }
  0x65   : >> { %2001 = vmatmul.mubr.msk.bf16.vlgmr.msra.gmra.mxu0 %vm163_vm1, %v1199_v50  ;;  %2007 = vmatmul.mubr.msk.bf16.vlgmr.msra.gmra.mxu1 %vm163_vm1, %v1253_v51 }
  0x66   : >> { %2011 = vmatpush3.bf16.msra.mxu0 %v1312_v54  ;;  %2017 = vmatpush3.bf16.msra.mxu1 %v1366_v55 }
  0x67   : >> { %2012 = vmatprep.mubr.msk.bf16.mxu0 %vm2208_vm2, %v2207_v4  ;;  %2018 = vmatprep.mubr.msk.bf16.mxu1 %vm2208_vm2, %v2207_v4 }
  0x68   : >> { %2022 = vmatprep.subr.bf16.mxu0 %v2207_v4  ;;  %2028 = vmatprep.subr.bf16.mxu1 %v2207_v4 }
  0x6d   : >> { %2013 = vmatmul.mubr.msk.bf16.vlgmr.msra.gmra.mxu0 %vm163_vm1, %v1814_v62  ;;  %2019 = vmatmul.mubr.msk.bf16.vlgmr.msra.gmra.mxu1 %vm163_vm1, %v1818_v63 }
  0x6e   : >> { %2023 = vmatpush3.bf16.msra.mxu0 %v1429_v2  ;;  %2029 = vmatpush3.bf16.msra.mxu1 %v1492_v3 }
  0x6f   : >> { %2024 = vmatprep.mubr.msk.bf16.mxu0 %vm2208_vm2, %v2207_v4  ;;  %2030 = vmatprep.mubr.msk.bf16.mxu1 %vm2208_vm2, %v2207_v4 }
  0x70   : >> { %2034 = vmatprep.subr.bf16.mxu0 %v2207_v4 }
  0x75   : >> { %2025 = vmatmul.mubr.msk.bf16.vlgmr.msra.gmra.mxu0 %vm163_vm1, %v1424_v10  ;;  %2031 = vmatmul.mubr.msk.bf16.vlgmr.msra.gmra.mxu1 %vm163_vm1, %v1487_v11 }
  0x76   : >> { %2035 = vmatpush3.bf16.msra.mxu0 %v1546_v13  ;;  %2036 = vmatprep.mubr.msk.bf16.mxu0 %vm2208_vm2, %v2207_v4 }
  0x7d   : >> { %2037 = vmatmul.mubr.msk.bf16.vlgmr.msra.gmra.mxu0 %vm163_vm1, %v1541_v15 }
  0xdd   : >> { %v205_v16 = vpop.f32.mrf.mxu0  ;;  %v251_v17 = vpop.f32.mrf.mxu1 }
  0xde   : >> { %v252_v45 = vadd.f32 %v251_v17, %v205_v16 }
  0xdf   : >> { %v1894_v18 = vpop.f32.mrf.mxu0  ;;  %v1900_v19 = vpop.f32.mrf.mxu1 }
  0xe1   : >> { %v208_v20 = vpop.f32.mrf.mxu0  ;;  %v254_v21 = vpop.f32.mrf.mxu1 }
  0xe3   : >> { %v1895_v22 = vpop.f32.mrf.mxu0  ;;  %v1901_v23 = vpop.f32.mrf.mxu1 }
  0xe5   : >> { %v313_v24 = vpop.f32.mrf.mxu0  ;;  %v376_v25 = vpop.f32.mrf.mxu1 }
  0xe6   : >> { %v319_v48 = vadd.f32 %v313_v24, %v252_v45 }
  0xe7   : >> { %v1906_v26 = vpop.f32.mrf.mxu0  ;;  %v1912_v27 = vpop.f32.mrf.mxu1 }
  0xe8   : >> { %v382_v53 = vadd.f32 %v376_v25, %v319_v48 }
  0xe9   : >> { %v316_v28 = vpop.f32.mrf.mxu0  ;;  %v379_v29 = vpop.f32.mrf.mxu1 }
  0xeb   : >> { %v1907_v30 = vpop.f32.mrf.mxu0  ;;  %v1913_v31 = vpop.f32.mrf.mxu1 }
  0xed   : >> { %v430_v4 = vpop.f32.mrf.mxu0  ;;  %v484_v32 = vpop.f32.mrf.mxu1 }
  0xee   : >> { %v436_v56 = vadd.f32 %v430_v4, %v382_v53 }
  0xef   : >> { %v1918_v33 = vpop.f32.mrf.mxu0  ;;  %v1924_v34 = vpop.f32.mrf.mxu1 }
  0xf0   : >> { %v490_v61 = vadd.f32 %v484_v32, %v436_v56 }
  0xf1   : >> { %v433_v35 = vpop.f32.mrf.mxu0  ;;  %v487_v36 = vpop.f32.mrf.mxu1 }
  0xf3   : >> { %v1919_v37 = vpop.f32.mrf.mxu0  ;;  %v1925_v38 = vpop.f32.mrf.mxu1 }
  0xf5   : >> { %v538_v39 = vpop.f32.mrf.mxu0  ;;  %v601_v40 = vpop.f32.mrf.mxu1 }
  0xf6   : >> { %v544_v2 = vadd.f32 %v538_v39, %v490_v61 }
  0xf7   : >> { %v1930_v41 = vpop.f32.mrf.mxu0  ;;  %v1936_v42 = vpop.f32.mrf.mxu1 }
  0xf8   : >> { %v607_v8 = vadd.f32 %v601_v40, %v544_v2 }
  0xf9   : >> { %v541_v43 = vpop.f32.mrf.mxu0  ;;  %v604_v44 = vpop.f32.mrf.mxu1 }
  0xfb   : >> { %v1931_v46 = vpop.f32.mrf.mxu0  ;;  %v1937_v47 = vpop.f32.mrf.mxu1 }
  0xfd   : >> { %v664_v49 = vpop.f32.mrf.mxu0  ;;  %v718_v50 = vpop.f32.mrf.mxu1 }
  0xfe   : >> { %v670_v11 = vadd.f32 %v664_v49, %v607_v8 }
  0xff   : >> { %v1942_v51 = vpop.f32.mrf.mxu0  ;;  %v1948_v52 = vpop.f32.mrf.mxu1 }
 0x100   : >> { %v724_v16 = vadd.f32 %v718_v50, %v670_v11 }
 0x101   : >> { %v667_v54 = vpop.f32.mrf.mxu0  ;;  %v721_v55 = vpop.f32.mrf.mxu1 }
 0x103   : >> { %v1943_v57 = vpop.f32.mrf.mxu0  ;;  %v1949_v58 = vpop.f32.mrf.mxu1 }
 0x105   : >> { %v772_v59 = vpop.f32.mrf.mxu0  ;;  %v826_v60 = vpop.f32.mrf.mxu1 }
 0x106   : >> { %v778_v19 = vadd.f32 %v772_v59, %v724_v16 }
 0x107   : >> { %v1954_v62 = vpop.f32.mrf.mxu0  ;;  %v1960_v63 = vpop.f32.mrf.mxu1 }
 0x108   : >> { %v832_v24 = vadd.f32 %v826_v60, %v778_v19 }
 0x109   : >> { %v775_v3 = vpop.f32.mrf.mxu0  ;;  %v829_v5 = vpop.f32.mrf.mxu1 }
 0x10b   : >> { %v1955_v6 = vpop.f32.mrf.mxu0  ;;  %v1961_v7 = vpop.f32.mrf.mxu1 }
 0x10d   : >> { %v889_v9 = vpop.f32.mrf.mxu0  ;;  %v952_v10 = vpop.f32.mrf.mxu1 }
 0x10e   : >> { %v895_v27 = vadd.f32 %v889_v9, %v832_v24 }
 0x10f   : >> { %v1966_v12 = vpop.f32.mrf.mxu0  ;;  %v1972_v13 = vpop.f32.mrf.mxu1 }
 0x110   : >> { %v958_v4 = vadd.f32 %v952_v10, %v895_v27 }
 0x111   : >> { %v892_v14 = vpop.f32.mrf.mxu0  ;;  %v955_v15 = vpop.f32.mrf.mxu1 }
 0x113   : >> { %v1967_v17 = vpop.f32.mrf.mxu0  ;;  %v1973_v18 = vpop.f32.mrf.mxu1 }
 0x115   : >> { %v1006_v20 = vpop.f32.mrf.mxu0  ;;  %v1060_v21 = vpop.f32.mrf.mxu1 }
 0x116   : >> { %v1012_v34 = vadd.f32 %v1006_v20, %v958_v4 }
 0x117   : >> { %v1978_v22 = vpop.f32.mrf.mxu0  ;;  %v1984_v23 = vpop.f32.mrf.mxu1 }
 0x118   : >> { %v1066_v39 = vadd.f32 %v1060_v21, %v1012_v34 }
 0x119   : >> { %v1009_v25 = vpop.f32.mrf.mxu0  ;;  %v1063_v26 = vpop.f32.mrf.mxu1 }
 0x11b   : >> { %v1979_v28 = vpop.f32.mrf.mxu0  ;;  %v1985_v29 = vpop.f32.mrf.mxu1 }
 0x11d   : >> { %v1114_v30 = vpop.f32.mrf.mxu0  ;;  %v1177_v31 = vpop.f32.mrf.mxu1 }
 0x11e   : >> { %v1120_v42 = vadd.f32 %v1114_v30, %v1066_v39 }
 0x11f   : >> { %v1990_v32 = vpop.f32.mrf.mxu0  ;;  %v1996_v33 = vpop.f32.mrf.mxu1 }
 0x120   : >> { %v1183_v47 = vadd.f32 %v1177_v31, %v1120_v42 }
 0x121   : >> { %v1117_v35 = vpop.f32.mrf.mxu0  ;;  %v1180_v36 = vpop.f32.mrf.mxu1 }
 0x123   : >> { %v1991_v37 = vpop.f32.mrf.mxu0  ;;  %v1997_v38 = vpop.f32.mrf.mxu1 }
 0x125   : >> { %v1240_v40 = vpop.f32.mrf.mxu0  ;;  %v1294_v41 = vpop.f32.mrf.mxu1 }
 0x126   : >> { %v1246_v50 = vadd.f32 %v1240_v40, %v1183_v47 }
 0x127   : >> { %v2002_v43 = vpop.f32.mrf.mxu0  ;;  %v2008_v44 = vpop.f32.mrf.mxu1 }
 0x128   : >> { %v1300_v55 = vadd.f32 %v1294_v41, %v1246_v50 }
 0x129   : >> { %v1243_v45 = vpop.f32.mrf.mxu0  ;;  %v1297_v46 = vpop.f32.mrf.mxu1 }
 0x12b   : >> { %v2003_v48 = vpop.f32.mrf.mxu0  ;;  %v2009_v49 = vpop.f32.mrf.mxu1 }
 0x12d   : >> { %v1348_v51 = vpop.f32.mrf.mxu0  ;;  %v1402_v52 = vpop.f32.mrf.mxu1 }
 0x12e   : >> { %v1354_v58 = vadd.f32 %v1348_v51, %v1300_v55 }
 0x12f   : >> { %v2014_v53 = vpop.f32.mrf.mxu0  ;;  %v2020_v54 = vpop.f32.mrf.mxu1 }
 0x130   : >> { %v1408_v63 = vadd.f32 %v1402_v52, %v1354_v58 }
 0x131   : >> { %v1351_v56 = vpop.f32.mrf.mxu0  ;;  %v1405_v57 = vpop.f32.mrf.mxu1 }
 0x133   : >> { %v2015_v59 = vpop.f32.mrf.mxu0  ;;  %v2021_v60 = vpop.f32.mrf.mxu1 }
 0x135   : >> { %v1465_v61 = vpop.f32.mrf.mxu0  ;;  %v1528_v62 = vpop.f32.mrf.mxu1 }
 0x136   : >> { %v1471_v5 = vadd.f32 %v1465_v61, %v1408_v63 }
 0x137   : >> { %v2026_v2 = vpop.f32.mrf.mxu0  ;;  %v2032_v3 = vpop.f32.mrf.mxu1 }
 0x138   : >> { %v1534_v10 = vadd.f32 %v1528_v62, %v1471_v5 }
 0x139   : >> { %v1468_v6 = vpop.f32.mrf.mxu0  ;;  %v1531_v7 = vpop.f32.mrf.mxu1 }
 0x13b   : >> { %v2027_v8 = vpop.f32.mrf.mxu0  ;;  %v2033_v9 = vpop.f32.mrf.mxu1 }
 0x13d   : >> { %v1582_v11 = vpop.f32.mrf.mxu0 }
 0x13e   : >> { %v1588_v12 = vadd.f32 %v1582_v11, %v1534_v10 }
 0x13f   : >> { %v2038_v13 = vpop.f32.mrf.mxu0 }
 0x140   : >> { %v1590_v14 = vsel %vm1589_vm3, %v1588_v12, 0.0  ;;  %v1598_v15 = vmul.f32 %v1588_v12, %v1588_v12 }
 0x141   : >> { %v1591_v16 = vrot.slane %v1590_v14, 4  ;;  %v1585_v17 = vpop.f32.mrf.mxu0 }
 0x142   : >> { %v1599_v18 = vsel %vm1589_vm3, %v1598_v15, 0.0 }
 0x143   : >> { %v1592_v19 = vadd.f32 %v1591_v16, %v1590_v14  ;;  %v1600_v20 = vrot.slane %v1599_v18, 4  ;;  %v2039_v21 = vpop.f32.mrf.mxu0 }
 0x145   : >> { %v1593_v22 = vrot.slane %v1592_v19, 2  ;;  %v1601_v23 = vadd.f32 %v1600_v20, %v1599_v18 }
 0x147   : >> { %v1594_v24 = vadd.f32 %v1593_v22, %v1592_v19  ;;  %v1602_v25 = vrot.slane %v1601_v23, 2 }
 0x149   : >> { %v1595_v26 = vrot.slane %v1594_v24, 1  ;;  %v1603_v27 = vadd.f32 %v1602_v25, %v1601_v23 }
 0x14b   : >> { %v1596_v28 = vadd.f32 %v1595_v26, %v1594_v24  ;;  %v1604_v29 = vrot.slane %v1603_v27, 1 }
 0x14d   : >> { %v1597_v30 = vadd.f32 %v2201_v1, %v1596_v28   ;;  %v1605_v31 = vadd.f32 %v1604_v29, %v1603_v27  ;;  %147 = sbr.rel (!%p145_p11) target bundleno = 24 (0x18), region = 104 }
 0x14f   : >> { %v1606_v4 = vadd.f32 %v2197_v0, %v1605_v31   ;;  %v2587_v1 = vmov %v1597_v30  ;;  %1608 = vst.msk [vmem:[%s2283_s28] sm:$0x1] (%p145_p11), %vm1607_vm4, %v1597_v30 }
 0x151   : >> { %v2586_v0 = vmov %v1606_v4  ;;  %1609 = vst.msk [vmem:[%s2283_s28 + $0x1] sm:$0x1] (%p145_p11), %vm1607_vm4, %v1606_v4 }
 0x152   : > { %2134 = shalt.err (!%p2131_p4)
}
 0x153   : > { %s2135_s13 = scalar_lea.hbm %s1622_s24, 32  ;;  %s2139_s4 = scalar_lea.hbm %s2583_s2, 64 }
 0x154   : > { %p2136_p7 = scmp.ne.s32.totalorder %s1622_s24, %s2135_s13  ;;  %p2140_p10 = scmp.lt.s32.totalorder %s1622_s24, %s2583_s2 }
 0x155   : > { %p2141_p11 = scmp.lt.s32.totalorder %s2139_s4, %s2135_s13 }
 0x156   : > { %p2137_p8 = pnand %p2136_p7, %p2263_p5 }
 0x157   : > { %p2142_p12 = por %p2141_p11, %p2140_p10 }
 0x158   : > { %p2138_p9 = pneg %p2137_p8 }
 0x15a   : > { %p2143_p13 = pnand %p2142_p12, %p2138_p9 }
 0x15c   : > { %2146 = shalt.err (!%p2143_p13)
}
 0x15d   : > { %2041 = dma.vmem_to_hbm [thread:$0]  (%p2263_p5), %s1625_s25, 32, %s1622_s24, %s1611_s26  }
 0x15e PF: > { %p2047_p0 = scmp.ge.s32.totalorder %s2193_s12, 2  ;;  %s1636_s7 = sand.u32 1, %s2181_s9  }
 0x15f   : > { %s1637_s8 = scalar_lea.sflag [#allocation3], %s1636_s7 }
 0x160   : > { %p2044_p1 = pnand %p2047_p0, %p2267_p6 }
 0x162   : > { %p2045_p2 = pneg %p2044_p1 }
 0x164   : > { %2176 = dma.done.wait (%p2045_p2), %s1637_s8, 32  }
 0x165   : > { %2178 = vsyncadd (%p2045_p2), %s1637_s8, 4294967264  ;;  %p12_p3 = scmp.ge.s32.totalorder %s2250_s15, 4   ;;  %s2588_s9 = smov %s2185_s10 }
 0x166   : > { %s2589_s10 = smov %s2189_s11  ;;  %s2590_s11 = smov %s2261_s18 }
 0x167   : > { %s2591_s12 = smov %s2250_s15  ;;  %14 = sbr.rel (!%p12_p3) target bundleno = 3 (0x3), region = 115 }
 0x16c   :  { %1642 = vsyncpa [#allocation3], 1 }
 0x16d   :  { %1644 = vsyncpa [#allocation3 + $0x1], 1 }

</bundles_post_ra>
